<compile_context>
chip_gen: v7x
topology: tpu7x:2x2x1
jax: 0.10.0
libtpu: 0.0.40
codegen_flags: <defaults>
</compile_context>

<pallas_src>
import functools
import math

import jax
import jax.numpy as jnp
from jax.experimental import pallas as pl
from jax.experimental.pallas import tpu as pltpu


def _round_up(a, b):
    return ((a + b - 1) // b) * b


# ----------------------------------------------------------------------------
# Pallas kernel: one output row strip of the valid conv, as k banded matmuls.
#   x_ref: (1, Hs_pad, Ws*Cin)   f32   full (padded) image for this batch elem
#   t_ref: (k, Ws*Cin, Wo*Cout)  bf16  banded Toeplitz weights, one per dy
#   b_ref: (1, Wo*Cout)          f32   bias broadcast over output columns
#   o_ref: (1, tile_h, Wo*Cout)  f32   one output row strip (lane-dense store)
# ----------------------------------------------------------------------------
def _toeplitz_conv_kernel(x_ref, t_ref, b_ref, o_ref, *, k, tile_h):
    row0 = pl.multiple_of(pl.program_id(1) * tile_h, tile_h)
    mo = o_ref.shape[-1]

    acc = jnp.zeros((tile_h, mo), jnp.float32)
    for dy in range(k):  # k matmuls per strip (vs k*k tiny dots before)
        rows = x_ref[0, pl.ds(row0 + dy, tile_h), :].astype(jnp.bfloat16)
        acc = acc + jnp.dot(rows, t_ref[dy], preferred_element_type=jnp.float32)
    o_ref[...] = (acc + b_ref[...])[None]


def _conv2d_toeplitz_pallas(x_flat, t_w, b_flat, *, k, ho, tile_h):
    """x_flat: (N, Hs, Ws*Cin) f32, t_w: (k, Ws*Cin, Wo*Cout) bf16,
    b_flat: (1, Wo*Cout) f32.  Returns (N, Ho_pad, Wo*Cout) f32; only the first
    `ho` rows are meaningful (the caller's gather never reads the padded rows)."""
    n, hs, wsc = x_flat.shape
    mo = t_w.shape[-1]

    rows = pl.cdiv(ho, tile_h)
    ho_pad = rows * tile_h
    hs_pad = ho_pad + k - 1
    pad = hs_pad - hs  # <= tile_h + k - 2 zero rows; keeps every strip read in bounds
    if pad:
        x_flat = jnp.pad(x_flat, ((0, 0), (0, pad), (0, 0)))

    kernel = functools.partial(_toeplitz_conv_kernel, k=k, tile_h=tile_h)
    return pl.pallas_call(
        kernel,
        out_shape=jax.ShapeDtypeStruct((n, ho_pad, mo), jnp.float32),
        grid=(n, rows),
        in_specs=[
            # Full image per batch element; block index constant along the row
            # axis so it is DMA'd once per image and revisited by every strip.
            pl.BlockSpec((1, hs_pad, wsc), lambda i, t: (i, 0, 0)),
            pl.BlockSpec((k, wsc, mo), lambda i, t: (0, 0, 0)),
            pl.BlockSpec((1, mo), lambda i, t: (0, 0)),
        ],
        out_specs=pl.BlockSpec((1, tile_h, mo), lambda i, t: (i, t, 0)),
        compiler_params=pltpu.CompilerParams(
            # No cross-iteration carry -> both axes safe to shard (v7x 2 TCs).
            dimension_semantics=("parallel", "parallel"),
            # Above the 16 MiB v5e scoped default; usage here is far smaller.
            vmem_limit_bytes=32 * 1024 * 1024,
        ),
    )(x_flat, t_w, b_flat)


# ----------------------------------------------------------------------------
# Wrapper-side weight expansion: banded Toeplitz matrices, one per kernel row.
#   w_hwio: (k, k, Cin, Cout)  ->  (k, Ws*Cin, Wo*Cout)
#   T[dy][p*Cin+c, x*Cout+o] = w[dy, p-x, c, o] if 0 <= p-x < k else 0
# ----------------------------------------------------------------------------
def _toeplitz_weights(w_hwio, ws, wo, k):
    cin, cout = w_hwio.shape[2], w_hwio.shape[3]
    p = jnp.arange(ws)[:, None]
    x = jnp.arange(wo)[None, :]
    dx = p - x                                  # (ws, wo)
    valid = (dx >= 0) & (dx < k)
    dx_c = jnp.clip(dx, 0, k - 1)
    t = w_hwio[:, dx_c, :, :]                   # (k, ws, wo, cin, cout)
    t = jnp.where(valid[None, :, :, None, None], t, 0.0)
    t = jnp.transpose(t, (0, 1, 3, 2, 4))       # (k, ws, cin, wo, cout)
    return t.reshape(k, ws * cin, wo * cout)


# ----------------------------------------------------------------------------
# Wrapper-side resizes matching the PyTorch reference (NHWC layout).
# ----------------------------------------------------------------------------
def _bilinear_resize_nhwc(x, out_h, out_w, scale=None):
    """F.interpolate(mode='bilinear', align_corners=False, antialias=False).
    Uses ratio = 1/scale when a scale_factor is given (PyTorch's modern default,
    recompute_scale_factor=False)."""
    n, h, w, c = x.shape
    if out_h == h and out_w == w and (scale is None or scale == 1):
        return x

    def src_idx(out_size, in_size):
        ratio = (1.0 / scale) if (scale is not None and scale > 0) else in_size / out_size
        i = jnp.arange(out_size, dtype=jnp.float32)
        s = jnp.maximum((i + 0.5) * ratio - 0.5, 0.0)
        lo = jnp.minimum(jnp.floor(s), in_size - 1.0)
        hi = jnp.minimum(lo + 1.0, in_size - 1.0)
        return lo.astype(jnp.int32), hi.astype(jnp.int32), s - lo

    h0, h1, hf = src_idx(out_h, h)
    w0, w1, wf = src_idx(out_w, w)
    top, bot = x[:, h0, :, :], x[:, h1, :, :]
    xr = top + (bot - top) * hf[None, :, None, None]
    left, right = xr[:, :, w0, :], xr[:, :, w1, :]
    return left + (right - left) * wf[None, None, :, None]


def _nearest_resize_nhwc(x, out_h, out_w, src_h=None, src_w=None):
    """F.interpolate(size=..., mode='nearest').  src_h/src_w give the logical
    source size when x carries extra (padded) rows that must never be read."""
    n, h, w, c = x.shape
    src_h = h if src_h is None else src_h
    src_w = w if src_w is None else src_w
    if out_h == h and out_w == w and src_h == h and src_w == w:
        return x
    hi = jnp.minimum(
        jnp.floor(jnp.arange(out_h, dtype=jnp.float32) * (src_h / out_h)).astype(jnp.int32),
        src_h - 1)
    wi = jnp.minimum(
        jnp.floor(jnp.arange(out_w, dtype=jnp.float32) * (src_w / out_w)).astype(jnp.int32),
        src_w - 1)
    return x[:, hi, :, :][:, :, wi, :]


# ----------------------------------------------------------------------------
# ScaleInvConv2d forward.
#   x: (N, Cin, H, W), weight: (Cout, Cin, k, k), bias: (Cout,)
# ----------------------------------------------------------------------------
def scale_inv_conv2d(x, weight, bias, *, kernel_size, scales=(0.5, 1, 2), tile_h=64):
    n, cin, h, w_dim = x.shape
    cout = weight.shape[0]
    k = kernel_size

    w_hwio = jnp.transpose(weight, (2, 3, 1, 0))        # (k, k, Cin, Cout)
    x_nhwc = jnp.transpose(x, (0, 2, 3, 1))             # NHWC once, outside the loop

    out = None
    for s in scales:
        hs, ws = int(math.floor(h * s)), int(math.floor(w_dim * s))
        ho, wo = hs - k + 1, ws - k + 1

        xs = _bilinear_resize_nhwc(x_nhwc, hs, ws, scale=s)
        x_flat = xs.reshape(n, hs, ws * cin)             # free reshape (contiguous)

        t_w = _toeplitz_weights(w_hwio, ws, wo, k).astype(jnp.bfloat16)
        b_flat = jnp.tile(bias, wo).reshape(1, wo * cout)  # bias[m % Cout]

        th = min(_round_up(tile_h, 8), _round_up(ho, 8))
        y_flat = _conv2d_toeplitz_pallas(x_flat, t_w, b_flat, k=k, ho=ho, tile_h=th)
        ys = y_flat.reshape(n, y_flat.shape[1], wo, cout)  # (N, Ho_pad, Wo, Cout)

        # Nearest resize back to (H, W); only the first `ho` rows are gathered,
        # so the padded rows are dropped without an explicit slice copy.
        ys = _nearest_resize_nhwc(ys, h, w_dim, src_h=ho, src_w=wo)
        out = ys if out is None else jnp.maximum(out, ys)  # max over scales

    return jnp.transpose(out, (0, 3, 1, 2))              # back to NCHW once


# ----------------------------------------------------------------------------
# Pure-JAX reference (same resizes, conv via lax, f32 HIGHEST) for correctness.
# ----------------------------------------------------------------------------
def _reference_forward(x, weight, bias, *, kernel_size, scales):
    n, cin, h, w_dim = x.shape
    x_nhwc = jnp.transpose(x, (0, 2, 3, 1))
    w_hwio = jnp.transpose(weight, (2, 3, 1, 0))
    out = None
    for s in scales:
        hs, ws = int(math.floor(h * s)), int(math.floor(w_dim * s))
        xs = _bilinear_resize_nhwc(x_nhwc, hs, ws, scale=s)
        ys = jax.lax.conv_general_dilated(
            xs, w_hwio, window_strides=(1, 1), padding="VALID",
            dimension_numbers=("NHWC", "HWIO", "NHWC"),
            precision=jax.lax.Precision.HIGHEST)
        ys = ys + bias.reshape(1, 1, 1, -1)
        ys = _nearest_resize_nhwc(ys, h, w_dim)
        out = ys if out is None else jnp.maximum(out, ys)
    return jnp.transpose(out, (0, 3, 1, 2))


if __name__ == "__main__":
    key = jax.random.PRNGKey(0)
    kx, kw, kb = jax.random.split(key, 3)

    batch, dim_in, dim_out, H, W = 2, 4, 8, 16, 16
    ksize = 3
    scales = (0.5, 1, 2)

    x = jax.random.normal(kx, (batch, dim_in, H, W), jnp.float32)
    weight = jax.random.normal(kw, (dim_out, dim_in, ksize, ksize), jnp.float32) * 0.1
    bias = jax.random.normal(kb, (dim_out,), jnp.float32) * 0.01

    fwd = jax.jit(functools.partial(scale_inv_conv2d, kernel_size=ksize, scales=scales))
    y = jax.block_until_ready(fwd(x, weight, bias))
    assert y.shape == (batch, dim_out, H, W), y.shape

    y_ref = jax.block_until_ready(
        _reference_forward(x, weight, bias, kernel_size=ksize, scales=scales))
    max_err = float(jnp.max(jnp.abs(y - y_ref)))
    # Tolerance covers bf16 MXU inputs (f32 accumulation) vs the f32 HIGHEST ref.
    assert max_err < 3e-2, f"max abs error {max_err}"

    print("KERNEL_OK")
</pallas_src>

<mosaic_0001>
module attributes {stable_mosaic.version = 11 : i64} {
  func.func @_toeplitz_conv_kernel(%arg0: i32, %arg1: i32, %arg2: memref<1x34x128xf32, #tpu.memory_space<vmem>>, %arg3: memref<3x128x240xbf16, #tpu.memory_space<vmem>>, %arg4: memref<1x240xf32, #tpu.memory_space<vmem>>, %arg5: memref<1x32x240xf32, #tpu.memory_space<vmem>>) attributes {dimension_semantics = [#tpu.dimension_semantics<parallel>, #tpu.dimension_semantics<parallel>], iteration_bounds = array<i64: 2, 1>, scalar_prefetch = 0 : i64, scratch_operands = 0 : i64, tpu.core_type = #tpu.core_type<tc>, window_params = [{transform_indices = @transform_0, window_bounds = array<i64: 1, 34, 128>}, {pipeline_mode = #tpu.pipeline_mode<synchronous>, transform_indices = @transform_1, window_bounds = array<i64: 3, 128, 240>}, {pipeline_mode = #tpu.pipeline_mode<synchronous>, transform_indices = @transform_2, window_bounds = array<i64: 1, 240>}, {transform_indices = @transform_3, window_bounds = array<i64: 1, 32, 240>}]} {
    %c32_i32 = arith.constant 32 : i32
    %0 = arith.muli %arg1, %c32_i32 : i32
    %1 = tpu.assume_multiple %0, 32 : i32
    %cst = arith.constant 0.000000e+00 : f32
    %2 = vector.broadcast %cst : f32 to vector<32x240xf32>
    %c0_i32 = arith.constant 0 : i32
    %3 = arith.addi %1, %c0_i32 : i32
    %c0 = arith.constant 0 : index
    %4 = arith.index_cast %3 : i32 to index
    %c0_0 = arith.constant 0 : index
    %5 = vector.load %arg2[%c0, %4, %c0_0] : memref<1x34x128xf32, #tpu.memory_space<vmem>>, vector<1x32x128xf32>
    %6 = vector.shape_cast %5 : vector<1x32x128xf32> to vector<32x128xf32>
    %7 = arith.truncf %6 : vector<32x128xf32> to vector<32x128xbf16>
    %c0_1 = arith.constant 0 : index
    %c0_2 = arith.constant 0 : index
    %c0_3 = arith.constant 0 : index
    %8 = vector.load %arg3[%c0_1, %c0_2, %c0_3] : memref<3x128x240xbf16, #tpu.memory_space<vmem>>, vector<1x128x240xbf16>
    %9 = vector.shape_cast %8 : vector<1x128x240xbf16> to vector<128x240xbf16>
    %cst_4 = arith.constant dense<0.000000e+00> : vector<32x240xf32>
    %10 = tpu.matmul %7, %9, %cst_4 {dimension_numbers = #tpu.dot_dimension_numbers<[1], [0], [0], [1], [0, 0, 1, 1], [], []>} : vector<32x128xbf16>, vector<128x240xbf16>, vector<32x240xf32> -> vector<32x240xf32>
    %11 = arith.addf %2, %10 : vector<32x240xf32>
    %c1_i32 = arith.constant 1 : i32
    %12 = arith.addi %1, %c1_i32 : i32
    %c0_5 = arith.constant 0 : index
    %13 = arith.index_cast %12 : i32 to index
    %c0_6 = arith.constant 0 : index
    %14 = vector.load %arg2[%c0_5, %13, %c0_6] : memref<1x34x128xf32, #tpu.memory_space<vmem>>, vector<1x32x128xf32>
    %15 = vector.shape_cast %14 : vector<1x32x128xf32> to vector<32x128xf32>
    %16 = arith.truncf %15 : vector<32x128xf32> to vector<32x128xbf16>
    %c1 = arith.constant 1 : index
    %c0_7 = arith.constant 0 : index
    %c0_8 = arith.constant 0 : index
    %17 = vector.load %arg3[%c1, %c0_7, %c0_8] : memref<3x128x240xbf16, #tpu.memory_space<vmem>>, vector<1x128x240xbf16>
    %18 = vector.shape_cast %17 : vector<1x128x240xbf16> to vector<128x240xbf16>
    %cst_9 = arith.constant dense<0.000000e+00> : vector<32x240xf32>
    %19 = tpu.matmul %16, %18, %cst_9 {dimension_numbers = #tpu.dot_dimension_numbers<[1], [0], [0], [1], [0, 0, 1, 1], [], []>} : vector<32x128xbf16>, vector<128x240xbf16>, vector<32x240xf32> -> vector<32x240xf32>
    %20 = arith.addf %11, %19 : vector<32x240xf32>
    %c2_i32 = arith.constant 2 : i32
    %21 = arith.addi %1, %c2_i32 : i32
    %c0_10 = arith.constant 0 : index
    %22 = arith.index_cast %21 : i32 to index
    %c0_11 = arith.constant 0 : index
    %23 = vector.load %arg2[%c0_10, %22, %c0_11] : memref<1x34x128xf32, #tpu.memory_space<vmem>>, vector<1x32x128xf32>
    %24 = vector.shape_cast %23 : vector<1x32x128xf32> to vector<32x128xf32>
    %25 = arith.truncf %24 : vector<32x128xf32> to vector<32x128xbf16>
    %c2 = arith.constant 2 : index
    %c0_12 = arith.constant 0 : index
    %c0_13 = arith.constant 0 : index
    %26 = vector.load %arg3[%c2, %c0_12, %c0_13] : memref<3x128x240xbf16, #tpu.memory_space<vmem>>, vector<1x128x240xbf16>
    %27 = vector.shape_cast %26 : vector<1x128x240xbf16> to vector<128x240xbf16>
    %cst_14 = arith.constant dense<0.000000e+00> : vector<32x240xf32>
    %28 = tpu.matmul %25, %27, %cst_14 {dimension_numbers = #tpu.dot_dimension_numbers<[1], [0], [0], [1], [0, 0, 1, 1], [], []>} : vector<32x128xbf16>, vector<128x240xbf16>, vector<32x240xf32> -> vector<32x240xf32>
    %29 = arith.addf %20, %28 : vector<32x240xf32>
    %c0_15 = arith.constant 0 : index
    %c0_16 = arith.constant 0 : index
    %30 = vector.load %arg4[%c0_15, %c0_16] : memref<1x240xf32, #tpu.memory_space<vmem>>, vector<1x240xf32>
    %31 = vector.broadcast %30 : vector<1x240xf32> to vector<32x240xf32>
    %32 = arith.addf %29, %31 : vector<32x240xf32>
    %33 = vector.shape_cast %32 : vector<32x240xf32> to vector<1x32x240xf32>
    %c0_17 = arith.constant 0 : index
    %c0_18 = arith.constant 0 : index
    %c0_19 = arith.constant 0 : index
    %34 = vector.load %arg5[%c0_17, %c0_18, %c0_19] : memref<1x32x240xf32, #tpu.memory_space<vmem>>, vector<1x32x240xf32>
    tpu.vector_store %arg5[%c0_17, %c0_18, %c0_19], %33 {strides = array<i32>} : memref<1x32x240xf32, #tpu.memory_space<vmem>>, vector<1x32x240xf32>,
    return
  }
  func.func @transform_0(%arg0: i32, %arg1: i32) -> (i32, i32, i32) {
    %c0_i32 = arith.constant 0 : i32
    %c0_i32_0 = arith.constant 0 : i32
    %c0_i32_1 = arith.constant 0 : i32
    return %arg0, %c0_i32, %c0_i32_0 : i32, i32, i32
  }
  func.func @transform_1(%arg0: i32, %arg1: i32) -> (i32, i32, i32) {
    %c0_i32 = arith.constant 0 : i32
    %c0_i32_0 = arith.constant 0 : i32
    %c0_i32_1 = arith.constant 0 : i32
    %c0_i32_2 = arith.constant 0 : i32
    return %c0_i32, %c0_i32_0, %c0_i32_1 : i32, i32, i32
  }
  func.func @transform_2(%arg0: i32, %arg1: i32) -> (i32, i32) {
    %c0_i32 = arith.constant 0 : i32
    %c0_i32_0 = arith.constant 0 : i32
    %c0_i32_1 = arith.constant 0 : i32
    return %c0_i32, %c0_i32_0 : i32, i32
  }
  func.func @transform_3(%arg0: i32, %arg1: i32) -> (i32, i32, i32) {
    %c0_i32 = arith.constant 0 : i32
    %c0_i32_0 = arith.constant 0 : i32
    return %arg0, %arg1, %c0_i32 : i32, i32, i32
  }
}

module attributes {stable_mosaic.version = 11 : i64} {
  func.func @_toeplitz_conv_kernel(%arg0: i32, %arg1: i32, %arg2: memref<1x10x32xf32, #tpu.memory_space<vmem>>, %arg3: memref<3x32x48xbf16, #tpu.memory_space<vmem>>, %arg4: memref<1x48xf32, #tpu.memory_space<vmem>>, %arg5: memref<1x8x48xf32, #tpu.memory_space<vmem>>) attributes {dimension_semantics = [#tpu.dimension_semantics<parallel>, #tpu.dimension_semantics<parallel>], iteration_bounds = array<i64: 2, 1>, scalar_prefetch = 0 : i64, scratch_operands = 0 : i64, tpu.core_type = #tpu.core_type<tc>, window_params = [{transform_indices = @transform_0, window_bounds = array<i64: 1, 10, 32>}, {pipeline_mode = #tpu.pipeline_mode<synchronous>, transform_indices = @transform_1, window_bounds = array<i64: 3, 32, 48>}, {pipeline_mode = #tpu.pipeline_mode<synchronous>, transform_indices = @transform_2, window_bounds = array<i64: 1, 48>}, {transform_indices = @transform_3, window_bounds = array<i64: 1, 8, 48>}]} {
    %c8_i32 = arith.constant 8 : i32
    %0 = arith.muli %arg1, %c8_i32 : i32
    %1 = tpu.assume_multiple %0, 8 : i32
    %cst = arith.constant 0.000000e+00 : f32
    %2 = vector.broadcast %cst : f32 to vector<8x48xf32>
    %c0_i32 = arith.constant 0 : i32
    %3 = arith.addi %1, %c0_i32 : i32
    %c0 = arith.constant 0 : index
    %4 = arith.index_cast %3 : i32 to index
    %c0_0 = arith.constant 0 : index
    %5 = vector.load %arg2[%c0, %4, %c0_0] : memref<1x10x32xf32, #tpu.memory_space<vmem>>, vector<1x8x32xf32>
    %6 = vector.shape_cast %5 : vector<1x8x32xf32> to vector<8x32xf32>
    %7 = arith.truncf %6 : vector<8x32xf32> to vector<8x32xbf16>
    %c0_1 = arith.constant 0 : index
    %c0_2 = arith.constant 0 : index
    %c0_3 = arith.constant 0 : index
    %8 = vector.load %arg3[%c0_1, %c0_2, %c0_3] : memref<3x32x48xbf16, #tpu.memory_space<vmem>>, vector<1x32x48xbf16>
    %9 = vector.shape_cast %8 : vector<1x32x48xbf16> to vector<32x48xbf16>
    %cst_4 = arith.constant dense<0.000000e+00> : vector<8x48xf32>
    %10 = tpu.matmul %7, %9, %cst_4 {dimension_numbers = #tpu.dot_dimension_numbers<[1], [0], [0], [1], [0, 0, 1, 1], [], []>} : vector<8x32xbf16>, vector<32x48xbf16>, vector<8x48xf32> -> vector<8x48xf32>
    %11 = arith.addf %2, %10 : vector<8x48xf32>
    %c1_i32 = arith.constant 1 : i32
    %12 = arith.addi %1, %c1_i32 : i32
    %c0_5 = arith.constant 0 : index
    %13 = arith.index_cast %12 : i32 to index
    %c0_6 = arith.constant 0 : index
    %14 = vector.load %arg2[%c0_5, %13, %c0_6] : memref<1x10x32xf32, #tpu.memory_space<vmem>>, vector<1x8x32xf32>
    %15 = vector.shape_cast %14 : vector<1x8x32xf32> to vector<8x32xf32>
    %16 = arith.truncf %15 : vector<8x32xf32> to vector<8x32xbf16>
    %c1 = arith.constant 1 : index
    %c0_7 = arith.constant 0 : index
    %c0_8 = arith.constant 0 : index
    %17 = vector.load %arg3[%c1, %c0_7, %c0_8] : memref<3x32x48xbf16, #tpu.memory_space<vmem>>, vector<1x32x48xbf16>
    %18 = vector.shape_cast %17 : vector<1x32x48xbf16> to vector<32x48xbf16>
    %cst_9 = arith.constant dense<0.000000e+00> : vector<8x48xf32>
    %19 = tpu.matmul %16, %18, %cst_9 {dimension_numbers = #tpu.dot_dimension_numbers<[1], [0], [0], [1], [0, 0, 1, 1], [], []>} : vector<8x32xbf16>, vector<32x48xbf16>, vector<8x48xf32> -> vector<8x48xf32>
    %20 = arith.addf %11, %19 : vector<8x48xf32>
    %c2_i32 = arith.constant 2 : i32
    %21 = arith.addi %1, %c2_i32 : i32
    %c0_10 = arith.constant 0 : index
    %22 = arith.index_cast %21 : i32 to index
    %c0_11 = arith.constant 0 : index
    %23 = vector.load %arg2[%c0_10, %22, %c0_11] : memref<1x10x32xf32, #tpu.memory_space<vmem>>, vector<1x8x32xf32>
    %24 = vector.shape_cast %23 : vector<1x8x32xf32> to vector<8x32xf32>
    %25 = arith.truncf %24 : vector<8x32xf32> to vector<8x32xbf16>
    %c2 = arith.constant 2 : index
    %c0_12 = arith.constant 0 : index
    %c0_13 = arith.constant 0 : index
    %26 = vector.load %arg3[%c2, %c0_12, %c0_13] : memref<3x32x48xbf16, #tpu.memory_space<vmem>>, vector<1x32x48xbf16>
    %27 = vector.shape_cast %26 : vector<1x32x48xbf16> to vector<32x48xbf16>
    %cst_14 = arith.constant dense<0.000000e+00> : vector<8x48xf32>
    %28 = tpu.matmul %25, %27, %cst_14 {dimension_numbers = #tpu.dot_dimension_numbers<[1], [0], [0], [1], [0, 0, 1, 1], [], []>} : vector<8x32xbf16>, vector<32x48xbf16>, vector<8x48xf32> -> vector<8x48xf32>
    %29 = arith.addf %20, %28 : vector<8x48xf32>
    %c0_15 = arith.constant 0 : index
    %c0_16 = arith.constant 0 : index
    %30 = vector.load %arg4[%c0_15, %c0_16] : memref<1x48xf32, #tpu.memory_space<vmem>>, vector<1x48xf32>
    %31 = vector.broadcast %30 : vector<1x48xf32> to vector<8x48xf32>
    %32 = arith.addf %29, %31 : vector<8x48xf32>
    %33 = vector.shape_cast %32 : vector<8x48xf32> to vector<1x8x48xf32>
    %c0_17 = arith.constant 0 : index
    %c0_18 = arith.constant 0 : index
    %c0_19 = arith.constant 0 : index
    %34 = vector.load %arg5[%c0_17, %c0_18, %c0_19] : memref<1x8x48xf32, #tpu.memory_space<vmem>>, vector<1x8x48xf32>
    tpu.vector_store %arg5[%c0_17, %c0_18, %c0_19], %33 {strides = array<i32>} : memref<1x8x48xf32, #tpu.memory_space<vmem>>, vector<1x8x48xf32>,
    return
  }
  func.func @transform_0(%arg0: i32, %arg1: i32) -> (i32, i32, i32) {
    %c0_i32 = arith.constant 0 : i32
    %c0_i32_0 = arith.constant 0 : i32
    %c0_i32_1 = arith.constant 0 : i32
    return %arg0, %c0_i32, %c0_i32_0 : i32, i32, i32
  }
  func.func @transform_1(%arg0: i32, %arg1: i32) -> (i32, i32, i32) {
    %c0_i32 = arith.constant 0 : i32
    %c0_i32_0 = arith.constant 0 : i32
    %c0_i32_1 = arith.constant 0 : i32
    %c0_i32_2 = arith.constant 0 : i32
    return %c0_i32, %c0_i32_0, %c0_i32_1 : i32, i32, i32
  }
  func.func @transform_2(%arg0: i32, %arg1: i32) -> (i32, i32) {
    %c0_i32 = arith.constant 0 : i32
    %c0_i32_0 = arith.constant 0 : i32
    %c0_i32_1 = arith.constant 0 : i32
    return %c0_i32, %c0_i32_0 : i32, i32
  }
  func.func @transform_3(%arg0: i32, %arg1: i32) -> (i32, i32, i32) {
    %c0_i32 = arith.constant 0 : i32
    %c0_i32_0 = arith.constant 0 : i32
    return %arg0, %arg1, %c0_i32 : i32, i32, i32
  }
}

module attributes {stable_mosaic.version = 11 : i64} {
  func.func @_toeplitz_conv_kernel(%arg0: i32, %arg1: i32, %arg2: memref<1x18x64xf32, #tpu.memory_space<vmem>>, %arg3: memref<3x64x112xbf16, #tpu.memory_space<vmem>>, %arg4: memref<1x112xf32, #tpu.memory_space<vmem>>, %arg5: memref<1x16x112xf32, #tpu.memory_space<vmem>>) attributes {dimension_semantics = [#tpu.dimension_semantics<parallel>, #tpu.dimension_semantics<parallel>], iteration_bounds = array<i64: 2, 1>, scalar_prefetch = 0 : i64, scratch_operands = 0 : i64, tpu.core_type = #tpu.core_type<tc>, window_params = [{transform_indices = @transform_0, window_bounds = array<i64: 1, 18, 64>}, {pipeline_mode = #tpu.pipeline_mode<synchronous>, transform_indices = @transform_1, window_bounds = array<i64: 3, 64, 112>}, {pipeline_mode = #tpu.pipeline_mode<synchronous>, transform_indices = @transform_2, window_bounds = array<i64: 1, 112>}, {transform_indices = @transform_3, window_bounds = array<i64: 1, 16, 112>}]} {
    %c16_i32 = arith.constant 16 : i32
    %0 = arith.muli %arg1, %c16_i32 : i32
    %1 = tpu.assume_multiple %0, 16 : i32
    %cst = arith.constant 0.000000e+00 : f32
    %2 = vector.broadcast %cst : f32 to vector<16x112xf32>
    %c0_i32 = arith.constant 0 : i32
    %3 = arith.addi %1, %c0_i32 : i32
    %c0 = arith.constant 0 : index
    %4 = arith.index_cast %3 : i32 to index
    %c0_0 = arith.constant 0 : index
    %5 = vector.load %arg2[%c0, %4, %c0_0] : memref<1x18x64xf32, #tpu.memory_space<vmem>>, vector<1x16x64xf32>
    %6 = vector.shape_cast %5 : vector<1x16x64xf32> to vector<16x64xf32>
    %7 = arith.truncf %6 : vector<16x64xf32> to vector<16x64xbf16>
    %c0_1 = arith.constant 0 : index
    %c0_2 = arith.constant 0 : index
    %c0_3 = arith.constant 0 : index
    %8 = vector.load %arg3[%c0_1, %c0_2, %c0_3] : memref<3x64x112xbf16, #tpu.memory_space<vmem>>, vector<1x64x112xbf16>
    %9 = vector.shape_cast %8 : vector<1x64x112xbf16> to vector<64x112xbf16>
    %cst_4 = arith.constant dense<0.000000e+00> : vector<16x112xf32>
    %10 = tpu.matmul %7, %9, %cst_4 {dimension_numbers = #tpu.dot_dimension_numbers<[1], [0], [0], [1], [0, 0, 1, 1], [], []>} : vector<16x64xbf16>, vector<64x112xbf16>, vector<16x112xf32> -> vector<16x112xf32>
    %11 = arith.addf %2, %10 : vector<16x112xf32>
    %c1_i32 = arith.constant 1 : i32
    %12 = arith.addi %1, %c1_i32 : i32
    %c0_5 = arith.constant 0 : index
    %13 = arith.index_cast %12 : i32 to index
    %c0_6 = arith.constant 0 : index
    %14 = vector.load %arg2[%c0_5, %13, %c0_6] : memref<1x18x64xf32, #tpu.memory_space<vmem>>, vector<1x16x64xf32>
    %15 = vector.shape_cast %14 : vector<1x16x64xf32> to vector<16x64xf32>
    %16 = arith.truncf %15 : vector<16x64xf32> to vector<16x64xbf16>
    %c1 = arith.constant 1 : index
    %c0_7 = arith.constant 0 : index
    %c0_8 = arith.constant 0 : index
    %17 = vector.load %arg3[%c1, %c0_7, %c0_8] : memref<3x64x112xbf16, #tpu.memory_space<vmem>>, vector<1x64x112xbf16>
    %18 = vector.shape_cast %17 : vector<1x64x112xbf16> to vector<64x112xbf16>
    %cst_9 = arith.constant dense<0.000000e+00> : vector<16x112xf32>
    %19 = tpu.matmul %16, %18, %cst_9 {dimension_numbers = #tpu.dot_dimension_numbers<[1], [0], [0], [1], [0, 0, 1, 1], [], []>} : vector<16x64xbf16>, vector<64x112xbf16>, vector<16x112xf32> -> vector<16x112xf32>
    %20 = arith.addf %11, %19 : vector<16x112xf32>
    %c2_i32 = arith.constant 2 : i32
    %21 = arith.addi %1, %c2_i32 : i32
    %c0_10 = arith.constant 0 : index
    %22 = arith.index_cast %21 : i32 to index
    %c0_11 = arith.constant 0 : index
    %23 = vector.load %arg2[%c0_10, %22, %c0_11] : memref<1x18x64xf32, #tpu.memory_space<vmem>>, vector<1x16x64xf32>
    %24 = vector.shape_cast %23 : vector<1x16x64xf32> to vector<16x64xf32>
    %25 = arith.truncf %24 : vector<16x64xf32> to vector<16x64xbf16>
    %c2 = arith.constant 2 : index
    %c0_12 = arith.constant 0 : index
    %c0_13 = arith.constant 0 : index
    %26 = vector.load %arg3[%c2, %c0_12, %c0_13] : memref<3x64x112xbf16, #tpu.memory_space<vmem>>, vector<1x64x112xbf16>
    %27 = vector.shape_cast %26 : vector<1x64x112xbf16> to vector<64x112xbf16>
    %cst_14 = arith.constant dense<0.000000e+00> : vector<16x112xf32>
    %28 = tpu.matmul %25, %27, %cst_14 {dimension_numbers = #tpu.dot_dimension_numbers<[1], [0], [0], [1], [0, 0, 1, 1], [], []>} : vector<16x64xbf16>, vector<64x112xbf16>, vector<16x112xf32> -> vector<16x112xf32>
    %29 = arith.addf %20, %28 : vector<16x112xf32>
    %c0_15 = arith.constant 0 : index
    %c0_16 = arith.constant 0 : index
    %30 = vector.load %arg4[%c0_15, %c0_16] : memref<1x112xf32, #tpu.memory_space<vmem>>, vector<1x112xf32>
    %31 = vector.broadcast %30 : vector<1x112xf32> to vector<16x112xf32>
    %32 = arith.addf %29, %31 : vector<16x112xf32>
    %33 = vector.shape_cast %32 : vector<16x112xf32> to vector<1x16x112xf32>
    %c0_17 = arith.constant 0 : index
    %c0_18 = arith.constant 0 : index
    %c0_19 = arith.constant 0 : index
    %34 = vector.load %arg5[%c0_17, %c0_18, %c0_19] : memref<1x16x112xf32, #tpu.memory_space<vmem>>, vector<1x16x112xf32>
    tpu.vector_store %arg5[%c0_17, %c0_18, %c0_19], %33 {strides = array<i32>} : memref<1x16x112xf32, #tpu.memory_space<vmem>>, vector<1x16x112xf32>,
    return
  }
  func.func @transform_0(%arg0: i32, %arg1: i32) -> (i32, i32, i32) {
    %c0_i32 = arith.constant 0 : i32
    %c0_i32_0 = arith.constant 0 : i32
    %c0_i32_1 = arith.constant 0 : i32
    return %arg0, %c0_i32, %c0_i32_0 : i32, i32, i32
  }
  func.func @transform_1(%arg0: i32, %arg1: i32) -> (i32, i32, i32) {
    %c0_i32 = arith.constant 0 : i32
    %c0_i32_0 = arith.constant 0 : i32
    %c0_i32_1 = arith.constant 0 : i32
    %c0_i32_2 = arith.constant 0 : i32
    return %c0_i32, %c0_i32_0, %c0_i32_1 : i32, i32, i32
  }
  func.func @transform_2(%arg0: i32, %arg1: i32) -> (i32, i32) {
    %c0_i32 = arith.constant 0 : i32
    %c0_i32_0 = arith.constant 0 : i32
    %c0_i32_1 = arith.constant 0 : i32
    return %c0_i32, %c0_i32_0 : i32, i32
  }
  func.func @transform_3(%arg0: i32, %arg1: i32) -> (i32, i32, i32) {
    %c0_i32 = arith.constant 0 : i32
    %c0_i32_0 = arith.constant 0 : i32
    return %arg0, %arg1, %c0_i32 : i32, i32, i32
  }
}

</mosaic_0001>

<bundles_post_ra>
// kernel: tile.28
= control target key start
LH: loop header
LB: loop body
LE: loop exit
PB: predicated region body
PF: predicated region fallthrough
CT: control target
= control target key end

     0   :  { %s40_s0 = inlined_call_operand.vmem [shape: f32[8], index: 0, kind: input, shape index: {}]   ;;  %s41_s1 = inlined_call_operand.vmem [shape: f32[30,8], index: 1, kind: output, shape index: {}]  }
   0x1   :  { %v4_v0 = vld [vmem:[%s40_s0] ss:$0 sm:$0xff] }
   0x2   :  { %5 = vst [vmem:[%s41_s1] sm:$0xff] %v4_v0  ;;  %12 = vst [vmem:[%s41_s1 + $0x8] sm:$0xff] %v4_v0 }
   0x3   :  { %13 = vst [vmem:[%s41_s1 + $0x10] sm:$0xff] %v4_v0  ;;  %14 = vst [vmem:[%s41_s1 + $0x18] sm:$0xff] %v4_v0 }

// kernel: tile.29
= control target key start
LH: loop header
LB: loop body
LE: loop exit
PB: predicated region body
PF: predicated region fallthrough
CT: control target
= control target key end

     0   :  { %s19_s8 = smov 3  ;;  %s151_s9 = smov 120   ;;  %vm4_vm0 = vcmask 64512   ;;  %vm10_vm1 = vcmask 1048512   ;;  %vm16_vm2 = vcmask 982912   ;;  %vm23_vm3 = vcmask 917312   ;;  %s230_s0 = inlined_call_operand.vmem [shape: f32[30,8], index: 0, kind: input, shape index: {}]   ;;  %s231_s1 = inlined_call_operand.vmem [shape: f32[1,240], index: 1, kind: output, shape index: {}]  }
   0x1   :  { %v120_v0 = vld [vmem:[%s230_s0 + $0xf] sm:$0x1]   ;;  %v122_v1 = vld [vmem:[%s230_s0 + $0xd] ss:$16 sm:%s19_s8]   ;;  %s152_s12 = smov 104   ;;  %s26_s15 = smov 3 }
   0x2   :  { %8 = vrot.lane.b32.xlu0 %v120_v0, %s151_s9  ;;  %21 = vrot.lane.b32.xlu1 %v122_v1, %s152_s12  ;;  %v121_v2 = vld [vmem:[%s230_s0 + $0xe] sm:$0x1]   ;;  %s33_s18 = smov 3  ;;  %s40_s19 = smov 3  ;;  %vm30_vm4 = vcmask 851712   ;;  %vm37_vm5 = vcmask 786112  }
   0x3   :  { %v123_v3 = vld [vmem:[%s230_s0 + $0xc] ss:$16 sm:%s26_s15]   ;;  %s153_s20 = smov 112   ;;  %s154_s21 = smov 96   ;;  %v124_v4 = vld [vmem:[%s230_s0 + $0xb] ss:$16 sm:%s33_s18]  }
   0x4   :  { %v125_v5 = vld [vmem:[%s230_s0 + $0xa] ss:$16 sm:%s40_s19]   ;;  %s47_s26 = smov 3  ;;  %s54_s27 = smov 3  ;;  %vm44_vm6 = vcmask 720512   ;;  %vm51_vm7 = vcmask 654912  }
   0x5   :  { %s155_s28 = smov 88   ;;  %s156_s29 = smov 80   ;;  %v126_v6 = vld [vmem:[%s230_s0 + $0x9] ss:$16 sm:%s47_s26]   ;;  %v127_v7 = vld [vmem:[%s230_s0 + $0x8] ss:$16 sm:%s54_s27]  }
   0x6   :  { %14 = vrot.lane.b32.xlu0 %v121_v2, %s153_s20  ;;  %28 = vrot.lane.b32.xlu1 %v123_v3, %s154_s21  ;;  %s61_s5 = smov 3  ;;  %s68_s6 = smov 3  ;;  %vm58_vm8 = vcmask 589312   ;;  %vm65_vm9 = vcmask 523712   ;;  %vm72_vm10 = vcmask 458112   ;;  %vm79_vm11 = vcmask 392512  }
   0x7   :  { %s157_s7 = smov 72   ;;  %s158_s8 = smov 64   ;;  %v128_v8 = vld [vmem:[%s230_s0 + $0x7] ss:$16 sm:%s61_s5]   ;;  %v129_v9 = vld [vmem:[%s230_s0 + $0x6] ss:$16 sm:%s68_s6]  }
   0x8   :  { %s2_s11 = smov 3  ;;  %s75_s14 = smov 3  ;;  %vm86_vm12 = vcmask 326912   ;;  %vm93_vm13 = vcmask 261312   ;;  %vm100_vm14 = vcmask 195712   ;;  %vm107_vm15 = vcmask 130112  }
   0x9   :  { %v3_v10 = vld [vmem:[%s230_s0] ss:$16 sm:%s2_s11]   ;;  %s82_s17 = smov 3  ;;  %s159_s18 = smov 56   ;;  %v130_v11 = vld [vmem:[%s230_s0 + $0x5] ss:$16 sm:%s75_s14]  }
   0xa   :  { %35 = vrot.lane.b32.xlu0 %v124_v4, %s155_s28  ;;  %42 = vrot.lane.b32.xlu1 %v125_v5, %s156_s29  ;;  %5 = vst.msk [vmem:[#allocation0] ss:$8 sm:$0x3] %vm4_vm0, %v3_v10   ;;  %s160_s19 = smov 48   ;;  %v131_v12 = vld [vmem:[%s230_s0 + $0x4] ss:$16 sm:%s82_s17]  }
   0xb   :  { %s89_s24 = smov 3  ;;  %s96_s25 = smov 3 }
   0xc   :  { %s161_s26 = smov 40   ;;  %s162_s27 = smov 32   ;;  %v132_v13 = vld [vmem:[%s230_s0 + $0x3] ss:$16 sm:%s89_s24]   ;;  %v133_v14 = vld [vmem:[%s230_s0 + $0x2] ss:$16 sm:%s96_s25]  }
   0xd   :  { %s103_s3 = smov 3  ;;  %s163_s4 = smov 24  }
   0xe   :  { %49 = vrot.lane.b32.xlu0 %v126_v6, %s157_s7  ;;  %56 = vrot.lane.b32.xlu1 %v127_v7, %s158_s8  ;;  %s164_s5 = smov 16   ;;  %v134_v15 = vld [vmem:[%s230_s0 + $0x1] ss:$16 sm:%s103_s3]   ;;  %s165_s0 = smov 8  }
  0x12   :  { %63 = vrot.lane.b32.xlu0 %v128_v8, %s159_s18  ;;  %70 = vrot.lane.b32.xlu1 %v129_v9, %s160_s19 }
  0x16   :  { %77 = vrot.lane.b32.xlu0 %v130_v11, %s161_s26  ;;  %84 = vrot.lane.b32.xlu1 %v131_v12, %s162_s27 }
  0x1a   :  { %91 = vrot.lane.b32.xlu0 %v132_v13, %s163_s4  ;;  %98 = vrot.lane.b32.xlu1 %v133_v14, %s164_s5 }
  0x1e   :  { %105 = vrot.lane.b32.xlu0 %v134_v15, %s165_s0 }
  0x74   :  { %v9_v16 = vpop.permute.xlu0 %8   ;;  %v22_v17 = vpop.permute.xlu1 %21  }
  0x75   :  { %11 = vst.msk [vmem:[#allocation0] sm:$0x1] %vm10_vm1, %v9_v16  }
  0x78   :  { %v15_v18 = vpop.permute.xlu0 %14   ;;  %v29_v19 = vpop.permute.xlu1 %28  }
  0x79   :  { %17 = vst.msk [vmem:[#allocation0] sm:$0x1] %vm16_vm2, %v15_v18  }
  0x7a   :  { %24 = vst.msk [vmem:[#allocation0] ss:$8 sm:$0x3] %vm23_vm3, %v22_v17  }
  0x7b   :  { %31 = vst.msk [vmem:[#allocation0] ss:$8 sm:$0x3] %vm30_vm4, %v29_v19  }
  0x7c   :  { %v36_v20 = vpop.permute.xlu0 %35   ;;  %v43_v21 = vpop.permute.xlu1 %42  }
  0x7d   :  { %38 = vst.msk [vmem:[#allocation0] ss:$8 sm:$0x3] %vm37_vm5, %v36_v20  }
  0x7e   :  { %45 = vst.msk [vmem:[#allocation0] ss:$8 sm:$0x3] %vm44_vm6, %v43_v21  }
  0x80   :  { %v50_v22 = vpop.permute.xlu0 %49   ;;  %v57_v23 = vpop.permute.xlu1 %56  }
  0x81   :  { %52 = vst.msk [vmem:[#allocation0] ss:$8 sm:$0x3] %vm51_vm7, %v50_v22  }
  0x82   :  { %59 = vst.msk [vmem:[#allocation0] ss:$8 sm:$0x3] %vm58_vm8, %v57_v23  }
  0x84   :  { %v64_v24 = vpop.permute.xlu0 %63   ;;  %v71_v25 = vpop.permute.xlu1 %70  }
  0x85   :  { %66 = vst.msk [vmem:[#allocation0] ss:$8 sm:$0x3] %vm65_vm9, %v64_v24  }
  0x86   :  { %73 = vst.msk [vmem:[#allocation0] ss:$8 sm:$0x3] %vm72_vm10, %v71_v25  }
  0x88   :  { %v78_v26 = vpop.permute.xlu0 %77   ;;  %v85_v27 = vpop.permute.xlu1 %84  }
  0x89   :  { %80 = vst.msk [vmem:[#allocation0] ss:$8 sm:$0x3] %vm79_vm11, %v78_v26  }
  0x8a   :  { %87 = vst.msk [vmem:[#allocation0] ss:$8 sm:$0x3] %vm86_vm12, %v85_v27  }
  0x8c   :  { %v92_v28 = vpop.permute.xlu0 %91   ;;  %v99_v29 = vpop.permute.xlu1 %98  }
  0x8d   :  { %94 = vst.msk [vmem:[#allocation0] ss:$8 sm:$0x3] %vm93_vm13, %v92_v28  }
  0x8e   :  { %101 = vst.msk [vmem:[#allocation0] ss:$8 sm:$0x3] %vm100_vm14, %v99_v29  }
  0x90   :  { %v106_v30 = vpop.permute.xlu0 %105  }
  0x91   :  { %108 = vst.msk [vmem:[#allocation0] ss:$8 sm:$0x3] %vm107_vm15, %v106_v30  }
  0x98   :  { %v112_v31 = vld [vmem:[#allocation0] sm:$0x1]  ;;  %v116_v32 = vld [vmem:[#allocation0 + $0x8] sm:$0x1] }
  0x99   :  { %114 = vst [vmem:[%s231_s1] sm:$0x1] %v112_v31  ;;  %135 = vst [vmem:[%s231_s1 + $0x1] sm:$0x1] %v116_v32 }

// kernel: scale_inv_conv2d.5
= control target key start
LH: loop header
LB: loop body
LE: loop exit
PB: predicated region body
PF: predicated region fallthrough
CT: control target
= control target key end

     0   :  { %s1076_s12 = smov 0   ;;  %s1078_s13 = smov 0   ;;  %s1288_s0 = inlined_call_operand.vmem [shape: f32[2,34,128], index: 0, kind: input, shape index: {}]   ;;  %s1289_s1 = inlined_call_operand.vmem [shape: bf16[3,128,240], index: 1, kind: input, shape index: {}]   ;;  %s1290_s2 = inlined_call_operand.vmem [shape: f32[1,240], index: 2, kind: input, shape index: {}]   ;;  %s1291_s3 = inlined_call_operand.vmem [shape: f32[2,32,240], index: 3, kind: output, shape index: {}]  }
   0x1   :  { %s1080_s14 = smov 0  }
   0x2 LB: > { %s25_s15 = sadd.s32 1, %s1049_s13  ;;  %p806_p0 = scmp.ge.s32.totalorder %s1053_s14, 1  ;;  %s1053_s14 = sphi %s1080_s14, %s13_s14   ;;  %s1049_s13 = sphi %s1078_s13, %s1293_s13   ;;  %s1045_s12 = sphi %s1076_s12, %s1292_s12  }
   0x3   : > { %p27_p1 = scmp.ge.s32.totalorder %s25_s15, 2  ;;  %p151_p2 = scmp.lt.s32.totalorder %s1053_s14, 3 }
   0x5   : > { %s1295_s15 = smov (%p27_p1, %s25_s15), 0  ;;  %p152_p3 = pnand %p806_p0, %p151_p2 }
   0x6   : > { %v959_v0 = vld [vmem:[%s1289_s1 + $0x84] ss:$8 sps:$4 sm:$0xff] (!%p152_p3)   ;;  %v1055_v2 = vmov (!%p152_p3), 0   ;;  %v963_v3 = vld [vmem:[%s1289_s1 + $0x80] ss:$8 sps:$4 sm:$0xff] (!%p152_p3)   ;;  %p180_p4 = scmp.lt.s32.totalorder (!%p152_p3), %s1045_s12, 1 }
   0x7   : > { %155 = sbr.rel (%p152_p3) target bundleno = 292 (0x124), region = 32  ;;  %v961_v1 = vld [vmem:[%s1289_s1 + $0x4] ss:$8 sps:$4 sm:$0xff] (!%p152_p3)   ;;  %358 = vmatprep.mubr.bf16.mxu1 (!%p152_p3), %v1055_v2  ;;  %491 = vmatprep.mubr.bf16.mxu0 (!%p152_p3), %v1055_v2  ;;  %v964_v4 = vld [vmem:[%s1289_s1] ss:$8 sps:$4 sm:$0xff] (!%p152_p3)   ;;  %vm699_vm0 = vcmask (!%p152_p3), 916480  }
   0x8   : > { %326 = vmatprep.subr.bf16.mxu1 (!%p152_p3), %v959_v0  ;;  %459 = vmatprep.subr.bf16.mxu0 (!%p152_p3), %v961_v1  ;;  %v965_v5 = vld [vmem:[%s1289_s1 + $0x94] ss:$8 sps:$4 sm:$0xff] (!%p152_p3)   ;;  %v969_v7 = vld [vmem:[%s1289_s1 + $0x90] ss:$8 sps:$4 sm:$0xff] (!%p152_p3)   ;;  %v971_v9 = vld [vmem:[%s1289_s1 + $0xa4] ss:$8 sps:$4 sm:$0xff] (!%p152_p3)  }
   0x9   : > { %327 = vmatpush1.bf16.msra.mxu1 (!%p152_p3), %v963_v3  ;;  %460 = vmatpush1.bf16.msra.mxu0 (!%p152_p3), %v964_v4  ;;  %v967_v6 = vld [vmem:[%s1289_s1 + $0x14] ss:$8 sps:$4 sm:$0xff] (!%p152_p3)   ;;  %v970_v8 = vld [vmem:[%s1289_s1 + $0x10] ss:$8 sps:$4 sm:$0xff] (!%p152_p3)   ;;  %v973_v10 = vld [vmem:[%s1289_s1 + $0x24] ss:$8 sps:$4 sm:$0xff] (!%p152_p3)  }
   0xa   : > { %328 = vmatprep.subr.bf16.mxu1 (!%p152_p3), %v965_v5  ;;  %461 = vmatprep.subr.bf16.mxu0 (!%p152_p3), %v967_v6  ;;  %v975_v11 = vld [vmem:[%s1289_s1 + $0xa0] ss:$8 sps:$4 sm:$0xff] (!%p152_p3)   ;;  %v977_v13 = vld [vmem:[%s1289_s1 + $0xb4] ss:$8 sps:$4 sm:$0xff] (!%p152_p3)   ;;  %v981_v15 = vld [vmem:[%s1289_s1 + $0xb0] ss:$8 sps:$4 sm:$0xff] (!%p152_p3)  }
   0xb   : > { %v976_v12 = vld [vmem:[%s1289_s1 + $0x20] ss:$8 sps:$4 sm:$0xff] (!%p152_p3)   ;;  %v979_v14 = vld [vmem:[%s1289_s1 + $0x34] ss:$8 sps:$4 sm:$0xff] (!%p152_p3)   ;;  %v982_v16 = vld [vmem:[%s1289_s1 + $0x30] ss:$8 sps:$4 sm:$0xff] (!%p152_p3)  }
   0xc   : > { %v983_v17 = vld [vmem:[%s1289_s1 + $0xc4] ss:$8 sps:$4 sm:$0xff] (!%p152_p3)   ;;  %v987_v19 = vld [vmem:[%s1289_s1 + $0xc0] ss:$8 sps:$4 sm:$0xff] (!%p152_p3)   ;;  %v989_v21 = vld [vmem:[%s1289_s1 + $0xd4] ss:$8 sps:$4 sm:$0xff] (!%p152_p3)  }
   0xd   : > { %329 = vmatpush1.bf16.msra.mxu1 (!%p152_p3), %v969_v7  ;;  %462 = vmatpush1.bf16.msra.mxu0 (!%p152_p3), %v970_v8  ;;  %v985_v18 = vld [vmem:[%s1289_s1 + $0x44] ss:$8 sps:$4 sm:$0xff] (!%p152_p3)   ;;  %v988_v20 = vld [vmem:[%s1289_s1 + $0x40] ss:$8 sps:$4 sm:$0xff] (!%p152_p3)   ;;  %v991_v22 = vld [vmem:[%s1289_s1 + $0x54] ss:$8 sps:$4 sm:$0xff] (!%p152_p3)  }
   0xe   : > { %330 = vmatprep.subr.bf16.mxu1 %v971_v9  ;;  %463 = vmatprep.subr.bf16.mxu0 %v973_v10  ;;  %s1297_s12 = smov (!%p180_p4, %s1045_s12), 1  ;;  %v993_v23 = vld [vmem:[%s1289_s1 + $0xd0] ss:$8 sps:$4 sm:$0xff]   ;;  %v995_v25 = vld [vmem:[%s1289_s1 + $0xe4] ss:$8 sps:$4 sm:$0xff]  }
   0xf   : > { %s933_s10 = smul.u32 40, %s1297_s12  ;;  %v994_v24 = vld [vmem:[%s1289_s1 + $0x50] ss:$8 sps:$4 sm:$0xff]   ;;  %v997_v26 = vld [vmem:[%s1289_s1 + $0x64] ss:$8 sps:$4 sm:$0xff]   ;;  %s900_s26 = sshll.u32 %s1297_s12, 6 }
  0x10   : > { %v999_v27 = vld [vmem:[%s1289_s1 + $0xe0] ss:$8 sps:$4 sm:$0xff]   ;;  %v1001_v29 = vld [vmem:[%s1289_s1 + $0xf4] ss:$8 sps:$4 sm:$0xff]   ;;  %v1005_v31 = vld [vmem:[%s1289_s1 + $0xf0] ss:$8 sps:$4 sm:$0xff]   ;;  %s194_s30 = scalar_lea.vmem %s1291_s3, %s900_s26 }
  0x11   : > { %331 = vmatpush1.bf16.msra.mxu1 %v975_v11  ;;  %464 = vmatpush1.bf16.msra.mxu0 %v976_v12  ;;  %v1000_v28 = vld [vmem:[%s1289_s1 + $0x60] ss:$8 sps:$4 sm:$0xff]   ;;  %s1190_s29 = scalar_lea.vmem %s1288_s0, %s933_s10  ;;  %v1003_v30 = vld [vmem:[%s1289_s1 + $0x74] ss:$8 sps:$4 sm:$0xff]   ;;  %v1006_v32 = vld [vmem:[%s1289_s1 + $0x70] ss:$8 sps:$4 sm:$0xff]  }
  0x12   : > { %332 = vmatprep.subr.bf16.mxu1 %v977_v13  ;;  %465 = vmatprep.subr.bf16.mxu0 %v979_v14  ;;  %v810_v33 = vld [vmem:[%s1190_s29 + $0x1] sm:$0xff]  ;;  %v811_v34 = vld [vmem:[%s1190_s29 + $0x9] sm:$0xff]  ;;  %v1012_v41 = vld [vmem:[%s1289_s1 + $0x114] ss:$8 sps:$4 sm:$0xff]  }
  0x13   : > { %v199_v35 = vld [vmem:[%s1190_s29] sm:$0xff]  ;;  %v200_v36 = vld [vmem:[%s1190_s29 + $0x8] sm:$0xff]  ;;  %v227_v38 = vpack.c.bf16 %v811_v34, %v810_v33  ;;  %v1010_v42 = vld [vmem:[%s1289_s1 + $0x110] ss:$8 sps:$4 sm:$0xff]  }
  0x14   : > { %v1009_v37 = vld [vmem:[%s1289_s1 + $0x104] ss:$8 sps:$4 sm:$0xff]   ;;  %v203_v39 = vpack.c.bf16 %v200_v36, %v199_v35  ;;  %v1007_v40 = vld [vmem:[%s1289_s1 + $0x100] ss:$8 sps:$4 sm:$0xff]   ;;  %v812_v43 = vld [vmem:[%s1190_s29 + $0x11] sm:$0xff] }
  0x15   : > { %333 = vmatpush1.bf16.msra.mxu1 %v981_v15  ;;  %466 = vmatpush1.bf16.msra.mxu0 %v982_v16  ;;  %v813_v44 = vld [vmem:[%s1190_s29 + $0x19] sm:$0xff]  ;;  %v201_v45 = vld [vmem:[%s1190_s29 + $0x10] sm:$0xff]  ;;  %v1015_v47 = vld [vmem:[%s1289_s1 + $0x124] ss:$8 sps:$4 sm:$0xff]  }
  0x16   : > { %334 = vmatprep.subr.bf16.mxu1 %v983_v17  ;;  %467 = vmatprep.subr.bf16.mxu0 %v985_v18  ;;  %v202_v46 = vld [vmem:[%s1190_s29 + $0x18] sm:$0xff]  ;;  %v228_v48 = vpack.c.bf16 %v813_v44, %v812_v43  ;;  %v1013_v50 = vld [vmem:[%s1289_s1 + $0x120] ss:$8 sps:$4 sm:$0xff]   ;;  %v1021_v53 = vld [vmem:[%s1289_s1 + $0x144] ss:$8 sps:$4 sm:$0xff]  }
  0x17   : > { %v204_v49 = vpack.c.bf16 %v202_v46, %v201_v45  ;;  %v1018_v51 = vld [vmem:[%s1289_s1 + $0x134] ss:$8 sps:$4 sm:$0xff]   ;;  %v1016_v52 = vld [vmem:[%s1289_s1 + $0x130] ss:$8 sps:$4 sm:$0xff]   ;;  %v1019_v54 = vld [vmem:[%s1289_s1 + $0x140] ss:$8 sps:$4 sm:$0xff]  }
  0x18   : > { %v1024_v55 = vld [vmem:[%s1289_s1 + $0x154] ss:$8 sps:$4 sm:$0xff]   ;;  %v1022_v56 = vld [vmem:[%s1289_s1 + $0x150] ss:$8 sps:$4 sm:$0xff]   ;;  %v1027_v57 = vld [vmem:[%s1289_s1 + $0x164] ss:$8 sps:$4 sm:$0xff]  }
  0x19   : > { %335 = vmatpush1.bf16.msra.mxu1 %v987_v19  ;;  %468 = vmatpush1.bf16.msra.mxu0 %v988_v20  ;;  %v1025_v58 = vld [vmem:[%s1289_s1 + $0x160] ss:$8 sps:$4 sm:$0xff]   ;;  %v1030_v59 = vld [vmem:[%s1289_s1 + $0x174] ss:$8 sps:$4 sm:$0xff]   ;;  %v1028_v60 = vld [vmem:[%s1289_s1 + $0x170] ss:$8 sps:$4 sm:$0xff]   ;;  %v680_v19 = vlaneseq }
  0x1a   : > { %336 = vmatprep.subr.bf16.mxu1 %v989_v21  ;;  %469 = vmatprep.subr.bf16.mxu0 %v991_v22  ;;  %v862_v61 = vld [vmem:[%s1190_s29 + $0x2] sm:$0xff]  ;;  %v863_v62 = vld [vmem:[%s1190_s29 + $0xa] sm:$0xff]  ;;  %v864_v63 = vld [vmem:[%s1190_s29 + $0x12] sm:$0xff] }
  0x1b   : > { %v865_v0 = vld [vmem:[%s1190_s29 + $0x1a] sm:$0xff]  ;;  %v518_v1 = vpack.c.bf16 %v863_v62, %v862_v61  ;;  %v681_v20 = vshrl.u32 %v680_v19, 7 }
  0x1c   : > { %v678_v22 = vld [vmem:[%s1290_s2] sm:$0x3] }
  0x1d   : > { %337 = vmatpush1.bf16.msra.mxu1 %v993_v23  ;;  %470 = vmatpush1.bf16.msra.mxu0 %v994_v24  ;;  %v682_v21 = vsub.s32 0, %v681_v20  ;;  %v686_v23 = vsub.s32 1, %v681_v20 }
  0x1e   : > { %338 = vmatprep.subr.bf16.mxu1 %v995_v25  ;;  %471 = vmatprep.subr.bf16.mxu0 %v997_v26 }
  0x1f   : > { %v683_v24 = vrot.slane %v678_v22, %v682_v21 }
  0x21   : > { %339 = vmatpush1.bf16.msra.mxu1 %v999_v27  ;;  %472 = vmatpush1.bf16.msra.mxu0 %v1000_v28  ;;  %v687_v27 = vrot.slane %v678_v22, %v686_v23 }
  0x22   : > { %340 = vmatprep.subr.bf16.mxu1 %v1001_v29  ;;  %473 = vmatprep.subr.bf16.mxu0 %v1003_v30 }
  0x25   : > { %341 = vmatpush1.bf16.msra.mxu1 %v1005_v31  ;;  %474 = vmatpush1.bf16.msra.mxu0 %v1006_v32 }
  0x26   : > { %617 = vmatprep.subr.bf16.mxu0 %v1009_v37  ;;  %901 = vmatprep.subr.bf16.mxu1 %v1009_v37 }
  0x28   : > { %359 = vmatmul.mubr.bf16.vlgmr.msra.gmra.mrb[0].mxu1 %v227_v38  ;;  %492 = vmatmul.mubr.bf16.vlgmr.msra.gmra.mrb[0].mxu0 %v203_v39 }
  0x29   : > { %618 = vmatpush1.bf16.msra.mxu0 %v1007_v40  ;;  %909 = vmatpush1.bf16.msra.mxu1 %v1007_v40 }
  0x2a   : > { %619 = vmatprep.subr.bf16.mxu0 %v1012_v41  ;;  %902 = vmatprep.subr.bf16.mxu1 %v1012_v41 }
  0x2b   : > { %368 = vmatprep.mubr.bf16.mxu1 %v1055_v2  ;;  %501 = vmatprep.mubr.bf16.mxu0 %v1055_v2 }
  0x2d   : > { %620 = vmatpush1.bf16.msra.mxu0 %v1010_v42  ;;  %910 = vmatpush1.bf16.msra.mxu1 %v1010_v42 }
  0x2e   : > { %621 = vmatprep.subr.bf16.mxu0 %v1015_v47  ;;  %903 = vmatprep.subr.bf16.mxu1 %v1015_v47 }
  0x30   : > { %369 = vmatmul.mubr.bf16.gmra.mrb[4].mxu1 %v228_v48  ;;  %502 = vmatmul.mubr.bf16.gmra.mrb[4].mxu0 %v204_v49 }
  0x31   : > { %622 = vmatpush1.bf16.msra.mxu0 %v1013_v50  ;;  %911 = vmatpush1.bf16.msra.mxu1 %v1013_v50 }
  0x32   : > { %623 = vmatprep.subr.bf16.mxu0 %v1018_v51  ;;  %904 = vmatprep.subr.bf16.mxu1 %v1018_v51 }
  0x33   : > { %649 = vmatprep.mubr.bf16.mxu0 %v1055_v2  ;;  %659 = vmatprep.mubr.bf16.mxu1 %v1055_v2  ;;  %v519_v2 = vpack.c.bf16 %v865_v0, %v864_v63 }
  0x35   : > { %624 = vmatpush1.bf16.msra.mxu0 %v1016_v52  ;;  %912 = vmatpush1.bf16.msra.mxu1 %v1016_v52 }
  0x36   : > { %625 = vmatprep.subr.bf16.mxu0 %v1021_v53  ;;  %905 = vmatprep.subr.bf16.mxu1 %v1021_v53 }
  0x39   : > { %626 = vmatpush1.bf16.msra.mxu0 %v1019_v54  ;;  %913 = vmatpush1.bf16.msra.mxu1 %v1019_v54 }
  0x3a   : > { %627 = vmatprep.subr.bf16.mxu0 %v1024_v55  ;;  %906 = vmatprep.subr.bf16.mxu1 %v1024_v55 }
  0x3d   : > { %628 = vmatpush1.bf16.msra.mxu0 %v1022_v56  ;;  %914 = vmatpush1.bf16.msra.mxu1 %v1022_v56 }
  0x3e   : > { %629 = vmatprep.subr.bf16.mxu0 %v1027_v57  ;;  %907 = vmatprep.subr.bf16.mxu1 %v1027_v57 }
  0x41   : > { %630 = vmatpush1.bf16.msra.mxu0 %v1025_v58  ;;  %915 = vmatpush1.bf16.msra.mxu1 %v1025_v58 }
  0x42   : > { %631 = vmatprep.subr.bf16.mxu0 %v1030_v59  ;;  %908 = vmatprep.subr.bf16.mxu1 %v1030_v59 }
  0x45   : > { %632 = vmatpush1.bf16.msra.mxu0 %v1028_v60  ;;  %916 = vmatpush1.bf16.msra.mxu1 %v1028_v60 }
  0x48   : > { %650 = vmatmul.mubr.bf16.vlgmr.msra.gmra.mrb[0].mxu0 %v518_v1  ;;  %660 = vmatmul.mubr.bf16.vlgmr.msra.gmra.mrb[8].mxu1 %v519_v2 }
  0xfb   : > { %v360_v3 = vpop.f32.mrb[0].mxu1 }
  0xfc   : > { %v362_v4 = vpop.f32.mrb[1].mxu1 }
  0xfd   : > { %v364_v5 = vpop.f32.mrb[2].mxu1 }
  0xfe   : > { %v366_v6 = vpop.f32.mrb[3].mxu1 }
 0x103   : > { %v370_v7 = vpop.f32.mrb[4].mxu1  ;;  %v503_v8 = vpop.f32.mrb[4].mxu0 }
 0x104   : > { %v504_v9 = vadd.f32 %v503_v8, %v370_v7  ;;  %v372_v10 = vpop.f32.mrb[5].mxu1  ;;  %v505_v11 = vpop.f32.mrb[5].mxu0 }
 0x105   : > { %v506_v12 = vadd.f32 %v505_v11, %v372_v10  ;;  %v374_v13 = vpop.f32.mrb[6].mxu1  ;;  %v507_v14 = vpop.f32.mrb[6].mxu0 }
 0x106   : > { %v508_v15 = vadd.f32 %v507_v14, %v374_v13  ;;  %v376_v16 = vpop.f32.mrb[7].mxu1  ;;  %v509_v17 = vpop.f32.mrb[7].mxu0 }
 0x107   : > { %v510_v18 = vadd.f32 %v509_v17, %v376_v16 }
 0x11b   : > { %v651_v25 = vpop.f32.mrb[0].mxu0  ;;  %v661_v26 = vpop.f32.mrb[8].mxu1 }
 0x11c   : > { %v917_v28 = vadd.f32 %v651_v25, %v360_v3  ;;  %v674_v29 = vadd.f32 %v661_v26, %v504_v9  ;;  %v653_v30 = vpop.f32.mrb[1].mxu0  ;;  %v663_v31 = vpop.f32.mrb[9].mxu1 }
 0x11d   : > { %v918_v32 = vadd.f32 %v653_v30, %v362_v4  ;;  %v675_v33 = vadd.f32 %v663_v31, %v506_v12  ;;  %v655_v34 = vpop.f32.mrb[2].mxu0  ;;  %v665_v35 = vpop.f32.mrb[10].mxu1 }
 0x11e   : > { %v690_v36 = vadd.f32 %v917_v28, %v683_v24  ;;  %v694_v37 = vadd.f32 %v683_v24, %v674_v29  ;;  %v919_v38 = vadd.f32 %v655_v34, %v364_v5  ;;  %v676_v39 = vadd.f32 %v665_v35, %v508_v15  ;;  %v657_v40 = vpop.f32.mrb[3].mxu0  ;;  %v667_v41 = vpop.f32.mrb[11].mxu1 }
 0x11f   : > { %v691_v42 = vadd.f32 %v918_v32, %v687_v27  ;;  %v695_v43 = vadd.f32 %v687_v27, %v675_v33  ;;  %v920_v44 = vadd.f32 %v657_v40, %v366_v6  ;;  %v677_v45 = vadd.f32 %v667_v41, %v510_v18 }
 0x120   : > { %698 = vst [vmem:[%s194_s30] sm:$0xff] %v690_v36  ;;  %703 = vst [vmem:[%s194_s30 + $0x20] sm:$0xff] %v694_v37  ;;  %v692_v46 = vadd.f32 %v919_v38, %v683_v24  ;;  %v696_v47 = vadd.f32 %v683_v24, %v676_v39 }
 0x121   : > { %700 = vst.msk [vmem:[%s194_s30 + $0x8] sm:$0xff] %vm699_vm0, %v691_v42  ;;  %704 = vst.msk [vmem:[%s194_s30 + $0x28] sm:$0xff] %vm699_vm0, %v695_v43  ;;  %v693_v48 = vadd.f32 %v920_v44, %v687_v27  ;;  %v697_v49 = vadd.f32 %v687_v27, %v677_v45 }
 0x122   : > { %701 = vst [vmem:[%s194_s30 + $0x10] sm:$0xff] %v692_v46  ;;  %705 = vst [vmem:[%s194_s30 + $0x30] sm:$0xff] %v696_v47 }
 0x123   : > { %702 = vst.msk [vmem:[%s194_s30 + $0x18] sm:$0xff] %vm699_vm0, %v693_v48  ;;  %706 = vst.msk [vmem:[%s194_s30 + $0x38] sm:$0xff] %vm699_vm0, %v697_v49 }
 0x124 PF: > { %s13_s14 = sadd.s32 1, %s1053_s14   ;;  %s1292_s12 = smov %s1049_s13 }
 0x125   : > { %p10_p5 = scmp.ge.s32.totalorder %s13_s14, 4   ;;  %s1293_s13 = smov %s1295_s15 }
 0x127   :  { %12 = sbr.rel (!%p10_p5) target bundleno = 2 (0x2), region = 67 }

// kernel: tile.18
= control target key start
LH: loop header
LB: loop body
LE: loop exit
PB: predicated region body
PF: predicated region fallthrough
CT: control target
= control target key end

     0   :  { %s22_s0 = inlined_call_operand.vmem [shape: f32[8], index: 0, kind: input, shape index: {}]   ;;  %s23_s1 = inlined_call_operand.vmem [shape: f32[6,8], index: 1, kind: output, shape index: {}]  }
   0x1   :  { %v4_v0 = vld [vmem:[%s22_s0] ss:$0 sm:$0xff] }
   0x2   :  { %5 = vst [vmem:[%s23_s1] sm:$0xff] %v4_v0 }

// kernel: tile.19
= control target key start
LH: loop header
LB: loop body
LE: loop exit
PB: predicated region body
PF: predicated region fallthrough
CT: control target
= control target key end

     0   :  { %s51_s10 = smov 40   ;;  %s52_s11 = smov 24   ;;  %vm3_vm0 = vcmask 64512   ;;  %vm9_vm1 = vcmask 392512   ;;  %vm15_vm2 = vcmask 326912   ;;  %vm21_vm3 = vcmask 261312   ;;  %s87_s0 = inlined_call_operand.vmem [shape: f32[6,8], index: 0, kind: input, shape index: {}]   ;;  %s88_s1 = inlined_call_operand.vmem [shape: f32[1,48], index: 1, kind: output, shape index: {}]  }
   0x1   :  { %v41_v0 = vld [vmem:[%s87_s0 + $0x5] sm:$0x1]   ;;  %v43_v1 = vld [vmem:[%s87_s0 + $0x3] sm:$0x1]   ;;  %v42_v2 = vld [vmem:[%s87_s0 + $0x4] sm:$0x1]  }
   0x2   :  { %7 = vrot.lane.b32.xlu0 %v41_v0, %s51_s10  ;;  %19 = vrot.lane.b32.xlu1 %v43_v1, %s52_s11  ;;  %v44_v3 = vld [vmem:[%s87_s0 + $0x2] sm:$0x1]   ;;  %v2_v4 = vld [vmem:[%s87_s0] sm:$0x1]   ;;  %s53_s18 = smov 32   ;;  %s54_s19 = smov 16  }
   0x3   :  { %4 = vst.msk [vmem:[#allocation0] sm:$0x1] %vm3_vm0, %v2_v4   ;;  %v45_v5 = vld [vmem:[%s87_s0 + $0x1] sm:$0x1]   ;;  %s55_s0 = smov 8   ;;  %vm27_vm4 = vcmask 195712  }
   0x4   :  { %vm33_vm5 = vcmask 130112  }
   0x6   :  { %13 = vrot.lane.b32.xlu0 %v42_v2, %s53_s18  ;;  %25 = vrot.lane.b32.xlu1 %v44_v3, %s54_s19 }
   0xa   :  { %31 = vrot.lane.b32.xlu0 %v45_v5, %s55_s0 }
  0x74   :  { %v8_v6 = vpop.permute.xlu0 %7   ;;  %v20_v7 = vpop.permute.xlu1 %19  }
  0x75   :  { %10 = vst.msk [vmem:[#allocation0] sm:$0x1] %vm9_vm1, %v8_v6  }
  0x78   :  { %v14_v8 = vpop.permute.xlu0 %13   ;;  %v26_v9 = vpop.permute.xlu1 %25  }
  0x79   :  { %16 = vst.msk [vmem:[#allocation0] sm:$0x1] %vm15_vm2, %v14_v8  }
  0x7a   :  { %22 = vst.msk [vmem:[#allocation0] sm:$0x1] %vm21_vm3, %v20_v7  }
  0x7b   :  { %28 = vst.msk [vmem:[#allocation0] sm:$0x1] %vm27_vm4, %v26_v9  }
  0x7c   :  { %v32_v10 = vpop.permute.xlu0 %31  }
  0x7d   :  { %34 = vst.msk [vmem:[#allocation0] sm:$0x1] %vm33_vm5, %v32_v10  }
  0x84   :  { %v38_v11 = vld [vmem:[#allocation0] sm:$0x1] }
  0x85   :  { %40 = vst [vmem:[%s88_s1] sm:$0x1] %v38_v11 }

// kernel: scale_inv_conv2d.3
= control target key start
LH: loop header
LB: loop body
LE: loop exit
PB: predicated region body
PF: predicated region fallthrough
CT: control target
= control target key end

     0   :  { %s614_s12 = smov 0   ;;  %s616_s13 = smov 0   ;;  %s675_s0 = inlined_call_operand.vmem [shape: f32[2,10,32], index: 0, kind: input, shape index: {}]   ;;  %s676_s1 = inlined_call_operand.vmem [shape: bf16[3,32,48], index: 1, kind: input, shape index: {}]   ;;  %s677_s2 = inlined_call_operand.vmem [shape: f32[1,48], index: 2, kind: input, shape index: {}]   ;;  %s678_s3 = inlined_call_operand.vmem [shape: f32[2,8,48], index: 3, kind: output, shape index: {}]  }
   0x1   :  { %s618_s14 = smov 0  }
   0x2 LB: > { %s25_s15 = sadd.s32 1, %s586_s13  ;;  %p476_p0 = scmp.ge.s32.totalorder %s590_s14, 1  ;;  %s590_s14 = sphi %s618_s14, %s13_s14   ;;  %s586_s13 = sphi %s616_s13, %s680_s13   ;;  %s582_s12 = sphi %s614_s12, %s679_s12  }
   0x3   : > { %p27_p1 = scmp.ge.s32.totalorder %s25_s15, 2  ;;  %p151_p2 = scmp.lt.s32.totalorder %s590_s14, 3 }
   0x5   : > { %s682_s15 = smov (%p27_p1, %s25_s15), 0  ;;  %p152_p3 = pnand %p476_p0, %p151_p2 }
   0x6   : > { %v562_v0 = vld [vmem:[%s676_s1 + $0x10] sm:$0xff] (!%p152_p3)   ;;  %v592_v1 = vmov (!%p152_p3), 0.0   ;;  %v563_v2 = vld [vmem:[%s676_s1] sm:$0xff] (!%p152_p3)   ;;  %v564_v3 = vld [vmem:[%s676_s1 + $0x18] sm:$0xff] (!%p152_p3)   ;;  %vm593_vm0 = vmmov (!%p152_p3), 0   ;;  %p177_p4 = scmp.lt.s32.totalorder (!%p152_p3), %s582_s12, 1 }
   0x7   : > { %155 = sbr.rel (%p152_p3) target bundleno = 245 (0xf5), region = 32  ;;  %512 = vmatprep.subr.bf16.mxu0 (!%p152_p3), %v592_v1  ;;  %520 = vmatprep.subr.bf16.mxu1 (!%p152_p3), %v592_v1  ;;  %v565_v4 = vld [vmem:[%s676_s1 + $0x8] sm:$0xff] (!%p152_p3)   ;;  %vm219_vm1 = vcmask (!%p152_p3), 261120   ;;  %v566_v7 = vld [vmem:[%s676_s1 + $0x20] sm:$0xff] (!%p152_p3)   ;;  %vm391_vm2 = vcmask (!%p152_p3), 392192  }
   0x8   : > { %513 = vmatpush3.bf16.msra.mxu0 (!%p152_p3), %v562_v0  ;;  %516 = vmatprep.mubr.msk.bf16.mxu0 (!%p152_p3), %vm593_vm0, %v592_v1  ;;  %v567_v10 = vld [vmem:[%s676_s1 + $0x28] sm:$0xff] (!%p152_p3)   ;;  %v499_v23 = vld [vmem:[%s677_s2] ss:$0 sm:$0xff] (!%p152_p3) }
   0x9   : > { %521 = vmatpush3.bf16.msra.mxu1 (!%p152_p3), %v563_v2  ;;  %514 = vmatprep.subr.bf16.mxu0 (!%p152_p3), %v592_v1 }
   0xa   : > { %522 = vmatprep.subr.bf16.mxu1 (!%p152_p3), %v592_v1  ;;  %524 = vmatprep.mubr.msk.bf16.mxu1 (!%p152_p3), %vm593_vm0, %v592_v1 }
   0xc   : > { %515 = vmatpush3.bf16.msra.mxu0 (!%p152_p3), %v564_v3 }
   0xd   : > { %523 = vmatpush3.bf16.msra.mxu1 (!%p152_p3), %v565_v4  ;;  %528 = vmatprep.subr.bf16.mxu0 (!%p152_p3), %v592_v1 }
   0xe   : > { %s684_s12 = smov (!%p177_p4, %s582_s12), 1 }
   0xf   : > { %s502_s24 = sshll.u32 %s684_s12, 4  ;;  %s479_s5 = sshll.u32 %s684_s12, 3 }
  0x10   : > { %s181_s27 = scalar_lea.vmem %s675_s0, %s502_s24  ;;  %s188_s10 = scalar_lea.vmem %s678_s3, %s479_s5 }
  0x11   : > { %v480_v5 = vld [vmem:[%s181_s27 + $0x1] sm:$0xff] }
  0x12   : > { %v192_v6 = vld [vmem:[%s181_s27] sm:$0xff]  ;;  %v201_v8 = vpack.c.bf16 %v480_v5, %v480_v5 }
  0x13   : > { %v193_v9 = vpack.c.bf16 %v192_v6, %v192_v6  ;;  %v491_v11 = vld [vmem:[%s181_s27 + $0x2] sm:$0xff] }
  0x14   : > { %517 = vmatmul.mubr.msk.bf16.vlgmr.msra.gmra.mrb[0].mxu0 %vm219_vm1, %v201_v8  ;;  %v321_v12 = vpack.c.bf16 %v491_v11, %v491_v11 }
  0x15   : > { %525 = vmatmul.mubr.msk.bf16.vlgmr.msra.gmra.mrb[0].mxu1 %vm219_vm1, %v193_v9  ;;  %529 = vmatpush3.bf16.msra.mxu0 %v566_v7 }
  0x16   : > { %532 = vmatprep.mubr.msk.bf16.mxu0 %vm593_vm0, %v592_v1  ;;  %530 = vmatprep.subr.bf16.mxu0 %v592_v1 }
  0x19   : > { %531 = vmatpush3.bf16.msra.mxu0 %v567_v10 }
  0x1c   : > { %533 = vmatmul.mubr.msk.bf16.vlgmr.msra.gmra.mrb[4].mxu0 %vm219_vm1, %v321_v12 }
  0xe7   : > { %v257_v13 = vpop.f32.mrb[0].mxu0 }
  0xe8   : > { %v312_v14 = vpop.f32.mrb[0].mxu1  ;;  %v518_v15 = vpop.f32.mrb[1].mxu0 }
  0xe9   : > { %v313_v16 = vadd.f32 %v312_v14, %v257_v13  ;;  %v526_v17 = vpop.f32.mrb[1].mxu1  ;;  %v260_v18 = vpop.f32.mrb[2].mxu0 }
  0xea   : > { %v315_v19 = vpop.f32.mrb[2].mxu1  ;;  %v519_v20 = vpop.f32.mrb[3].mxu0 }
  0xeb   : > { %v527_v21 = vpop.f32.mrb[3].mxu1 }
  0xef   : > { %v376_v22 = vpop.f32.mrb[4].mxu0 }
  0xf0   : > { %v382_v24 = vadd.f32 %v376_v22, %v313_v16  ;;  %v534_v25 = vpop.f32.mrb[5].mxu0 }
  0xf1   : > { %v379_v26 = vpop.f32.mrb[6].mxu0 }
  0xf2   : > { %v390_v27 = vadd.f32 %v499_v23, %v382_v24  ;;  %v535_v28 = vpop.f32.mrb[7].mxu0 }
  0xf4   : > { %392 = vst.msk [vmem:[%s188_s10] sm:$0xff] %vm391_vm2, %v390_v27 }
  0xf5 PF: > { %s13_s14 = sadd.s32 1, %s590_s14   ;;  %s679_s12 = smov %s586_s13 }
  0xf6   : > { %p10_p5 = scmp.ge.s32.totalorder %s13_s14, 4   ;;  %s680_s13 = smov %s682_s15 }
  0xf8   :  { %12 = sbr.rel (!%p10_p5) target bundleno = 2 (0x2), region = 67 }

// kernel: tile.23
= control target key start
LH: loop header
LB: loop body
LE: loop exit
PB: predicated region body
PF: predicated region fallthrough
CT: control target
= control target key end

     0   :  { %s28_s0 = inlined_call_operand.vmem [shape: f32[8], index: 0, kind: input, shape index: {}]   ;;  %s29_s1 = inlined_call_operand.vmem [shape: f32[14,8], index: 1, kind: output, shape index: {}]  }
   0x1   :  { %v4_v0 = vld [vmem:[%s28_s0] ss:$0 sm:$0xff] }
   0x2   :  { %5 = vst [vmem:[%s29_s1] sm:$0xff] %v4_v0  ;;  %8 = vst [vmem:[%s29_s1 + $0x8] sm:$0xff] %v4_v0 }

// kernel: tile.24
= control target key start
LH: loop header
LB: loop body
LE: loop exit
PB: predicated region body
PF: predicated region fallthrough
CT: control target
= control target key end

     0   :  { %s115_s10 = smov 104   ;;  %s116_s11 = smov 88   ;;  %vm3_vm0 = vcmask 64512   ;;  %vm9_vm1 = vcmask 917312   ;;  %vm15_vm2 = vcmask 851712   ;;  %vm21_vm3 = vcmask 786112   ;;  %s183_s0 = inlined_call_operand.vmem [shape: f32[14,8], index: 0, kind: input, shape index: {}]   ;;  %s184_s1 = inlined_call_operand.vmem [shape: f32[1,112], index: 1, kind: output, shape index: {}]  }
   0x1   :  { %v89_v0 = vld [vmem:[%s183_s0 + $0xd] sm:$0x1]   ;;  %v91_v1 = vld [vmem:[%s183_s0 + $0xb] sm:$0x1]   ;;  %v90_v2 = vld [vmem:[%s183_s0 + $0xc] sm:$0x1]  }
   0x2   :  { %7 = vrot.lane.b32.xlu0 %v89_v0, %s115_s10  ;;  %19 = vrot.lane.b32.xlu1 %v91_v1, %s116_s11  ;;  %v92_v3 = vld [vmem:[%s183_s0 + $0xa] sm:$0x1]   ;;  %s117_s16 = smov 96   ;;  %s118_s17 = smov 80   ;;  %v93_v4 = vld [vmem:[%s183_s0 + $0x9] sm:$0x1]  }
   0x3   :  { %v94_v5 = vld [vmem:[%s183_s0 + $0x8] sm:$0x1]   ;;  %v2_v6 = vld [vmem:[%s183_s0] sm:$0x1]   ;;  %s119_s24 = smov 72   ;;  %s120_s25 = smov 64  }
   0x4   :  { %4 = vst.msk [vmem:[#allocation0] sm:$0x1] %vm3_vm0, %v2_v6   ;;  %v95_v7 = vld [vmem:[%s183_s0 + $0x7] sm:$0x1]   ;;  %v96_v8 = vld [vmem:[%s183_s0 + $0x6] sm:$0x1]  }
   0x5   :  { %s121_s30 = smov 56   ;;  %s122_s2 = smov 48   ;;  %v97_v9 = vld [vmem:[%s183_s0 + $0x5] sm:$0x1]   ;;  %v98_v10 = vld [vmem:[%s183_s0 + $0x4] sm:$0x1]  }
   0x6   :  { %13 = vrot.lane.b32.xlu0 %v90_v2, %s117_s16  ;;  %25 = vrot.lane.b32.xlu1 %v92_v3, %s118_s17  ;;  %s123_s7 = smov 40   ;;  %s124_s8 = smov 32   ;;  %v99_v11 = vld [vmem:[%s183_s0 + $0x3] sm:$0x1]   ;;  %v100_v12 = vld [vmem:[%s183_s0 + $0x2] sm:$0x1]  }
   0x7   :  { %s125_s13 = smov 24   ;;  %s126_s14 = smov 16   ;;  %v101_v13 = vld [vmem:[%s183_s0 + $0x1] sm:$0x1]   ;;  %vm27_vm4 = vcmask 720512   ;;  %vm33_vm5 = vcmask 654912  }
   0x8   :  { %s127_s0 = smov 8   ;;  %vm39_vm6 = vcmask 589312   ;;  %vm45_vm7 = vcmask 523712   ;;  %vm51_vm8 = vcmask 458112   ;;  %vm57_vm9 = vcmask 392512  }
   0x9   :  { %vm63_vm10 = vcmask 326912   ;;  %vm69_vm11 = vcmask 261312   ;;  %vm75_vm12 = vcmask 195712   ;;  %vm81_vm13 = vcmask 130112  }
   0xa   :  { %31 = vrot.lane.b32.xlu0 %v93_v4, %s119_s24  ;;  %37 = vrot.lane.b32.xlu1 %v94_v5, %s120_s25 }
   0xe   :  { %43 = vrot.lane.b32.xlu0 %v95_v7, %s121_s30  ;;  %49 = vrot.lane.b32.xlu1 %v96_v8, %s122_s2 }
  0x12   :  { %55 = vrot.lane.b32.xlu0 %v97_v9, %s123_s7  ;;  %61 = vrot.lane.b32.xlu1 %v98_v10, %s124_s8 }
  0x16   :  { %67 = vrot.lane.b32.xlu0 %v99_v11, %s125_s13  ;;  %73 = vrot.lane.b32.xlu1 %v100_v12, %s126_s14 }
  0x1a   :  { %79 = vrot.lane.b32.xlu0 %v101_v13, %s127_s0 }
  0x74   :  { %v8_v14 = vpop.permute.xlu0 %7   ;;  %v20_v15 = vpop.permute.xlu1 %19  }
  0x75   :  { %10 = vst.msk [vmem:[#allocation0] sm:$0x1] %vm9_vm1, %v8_v14  }
  0x78   :  { %v14_v16 = vpop.permute.xlu0 %13   ;;  %v26_v17 = vpop.permute.xlu1 %25  }
  0x79   :  { %16 = vst.msk [vmem:[#allocation0] sm:$0x1] %vm15_vm2, %v14_v16  }
  0x7a   :  { %22 = vst.msk [vmem:[#allocation0] sm:$0x1] %vm21_vm3, %v20_v15  }
  0x7b   :  { %28 = vst.msk [vmem:[#allocation0] sm:$0x1] %vm27_vm4, %v26_v17  }
  0x7c   :  { %v32_v18 = vpop.permute.xlu0 %31   ;;  %v38_v19 = vpop.permute.xlu1 %37  }
  0x7d   :  { %34 = vst.msk [vmem:[#allocation0] sm:$0x1] %vm33_vm5, %v32_v18  }
  0x7e   :  { %40 = vst.msk [vmem:[#allocation0] sm:$0x1] %vm39_vm6, %v38_v19  }
  0x80   :  { %v44_v20 = vpop.permute.xlu0 %43   ;;  %v50_v21 = vpop.permute.xlu1 %49  }
  0x81   :  { %46 = vst.msk [vmem:[#allocation0] sm:$0x1] %vm45_vm7, %v44_v20  }
  0x82   :  { %52 = vst.msk [vmem:[#allocation0] sm:$0x1] %vm51_vm8, %v50_v21  }
  0x84   :  { %v56_v22 = vpop.permute.xlu0 %55   ;;  %v62_v23 = vpop.permute.xlu1 %61  }
  0x85   :  { %58 = vst.msk [vmem:[#allocation0] sm:$0x1] %vm57_vm9, %v56_v22  }
  0x86   :  { %64 = vst.msk [vmem:[#allocation0] sm:$0x1] %vm63_vm10, %v62_v23  }
  0x88   :  { %v68_v24 = vpop.permute.xlu0 %67   ;;  %v74_v25 = vpop.permute.xlu1 %73  }
  0x89   :  { %70 = vst.msk [vmem:[#allocation0] sm:$0x1] %vm69_vm11, %v68_v24  }
  0x8a   :  { %76 = vst.msk [vmem:[#allocation0] sm:$0x1] %vm75_vm12, %v74_v25  }
  0x8c   :  { %v80_v26 = vpop.permute.xlu0 %79  }
  0x8d   :  { %82 = vst.msk [vmem:[#allocation0] sm:$0x1] %vm81_vm13, %v80_v26  }
  0x94   :  { %v86_v27 = vld [vmem:[#allocation0] sm:$0x1] }
  0x95   :  { %88 = vst [vmem:[%s184_s1] sm:$0x1] %v86_v27 }

// kernel: scale_inv_conv2d.4
= control target key start
LH: loop header
LB: loop body
LE: loop exit
PB: predicated region body
PF: predicated region fallthrough
CT: control target
= control target key end

     0   :  { %s727_s12 = smov 0   ;;  %s729_s13 = smov 0   ;;  %s809_s0 = inlined_call_operand.vmem [shape: f32[2,18,64], index: 0, kind: input, shape index: {}]   ;;  %s810_s1 = inlined_call_operand.vmem [shape: bf16[3,64,112], index: 1, kind: input, shape index: {}]   ;;  %s811_s2 = inlined_call_operand.vmem [shape: f32[1,112], index: 2, kind: input, shape index: {}]   ;;  %s812_s3 = inlined_call_operand.vmem [shape: f32[2,16,112], index: 3, kind: output, shape index: {}]  }
   0x1   :  { %s731_s14 = smov 0  }
   0x2 LB: > { %s25_s15 = sadd.s32 1, %s699_s13  ;;  %p548_p0 = scmp.ge.s32.totalorder %s703_s14, 1  ;;  %s703_s14 = sphi %s731_s14, %s13_s14   ;;  %s699_s13 = sphi %s729_s13, %s814_s13   ;;  %s695_s12 = sphi %s727_s12, %s813_s12  }
   0x3   : > { %p27_p1 = scmp.ge.s32.totalorder %s25_s15, 2  ;;  %p151_p2 = scmp.lt.s32.totalorder %s703_s14, 3 }
   0x5   : > { %s816_s15 = smov (%p27_p1, %s25_s15), 0  ;;  %p152_p3 = pnand %p548_p0, %p151_p2 }
   0x6   : > { %v669_v0 = vld [vmem:[%s810_s1 + $0x20] sm:$0xff] (!%p152_p3)   ;;  %v705_v1 = vmov (!%p152_p3), 0.0   ;;  %v671_v3 = vld [vmem:[%s810_s1 + $0x28] sm:$0xff] (!%p152_p3)   ;;  %vm706_vm0 = vmmov (!%p152_p3), 0   ;;  %p179_p4 = scmp.lt.s32.totalorder (!%p152_p3), %s695_s12, 1  ;;  %v673_v5 = vld [vmem:[%s810_s1 + $0x30] sm:$0xff] (!%p152_p3)  }
   0x7   : > { %155 = sbr.rel (%p152_p3) target bundleno = 258 (0x102), region = 32  ;;  %606 = vmatprep.subr.bf16.mxu0 (!%p152_p3), %v705_v1  ;;  %618 = vmatprep.subr.bf16.mxu1 (!%p152_p3), %v705_v1  ;;  %v670_v2 = vld [vmem:[%s810_s1] sm:$0xff] (!%p152_p3)   ;;  %v672_v4 = vld [vmem:[%s810_s1 + $0x8] sm:$0xff] (!%p152_p3)   ;;  %v674_v6 = vld [vmem:[%s810_s1 + $0x10] sm:$0xff] (!%p152_p3)   ;;  %vm246_vm1 = vcmask (!%p152_p3), 523264   ;;  %vm452_vm2 = vcmask (!%p152_p3), 916480  }
   0x8   : > { %607 = vmatpush3.bf16.msra.mxu0 (!%p152_p3), %v669_v0  ;;  %614 = vmatprep.mubr.msk.bf16.mxu0 (!%p152_p3), %vm706_vm0, %v705_v1  ;;  %v675_v7 = vld [vmem:[%s810_s1 + $0x38] sm:$0xff] (!%p152_p3)   ;;  %v677_v15 = vld [vmem:[%s810_s1 + $0x40] sm:$0xff] (!%p152_p3)   ;;  %v678_v16 = vld [vmem:[%s810_s1 + $0x48] sm:$0xff] (!%p152_p3)  }
   0x9   : > { %619 = vmatpush3.bf16.msra.mxu1 (!%p152_p3), %v670_v2  ;;  %608 = vmatprep.subr.bf16.mxu0 (!%p152_p3), %v705_v1  ;;  %v676_v8 = vld [vmem:[%s810_s1 + $0x18] sm:$0xff] (!%p152_p3)   ;;  %v679_v17 = vld [vmem:[%s810_s1 + $0x50] sm:$0xff] (!%p152_p3)   ;;  %v587_v33 = vld [vmem:[%s811_s2] ss:$0 sm:$0xff] (!%p152_p3) }
   0xa   : > { %620 = vmatprep.subr.bf16.mxu1 (!%p152_p3), %v705_v1  ;;  %626 = vmatprep.mubr.msk.bf16.mxu1 (!%p152_p3), %vm706_vm0, %v705_v1  ;;  %v680_v18 = vld [vmem:[%s810_s1 + $0x58] sm:$0xff] (!%p152_p3)  }
   0xc   : > { %609 = vmatpush3.bf16.msra.mxu0 (!%p152_p3), %v671_v3 }
   0xd   : > { %621 = vmatpush3.bf16.msra.mxu1 (!%p152_p3), %v672_v4  ;;  %610 = vmatprep.subr.bf16.mxu0 (!%p152_p3), %v705_v1 }
   0xe   : > { %s818_s12 = smov (!%p179_p4, %s695_s12), 1  ;;  %622 = vmatprep.subr.bf16.mxu1 %v705_v1 }
   0xf   : > { %s642_s26 = smul.u32 24, %s818_s12  ;;  %s590_s21 = sshll.u32 %s818_s12, 4 }
  0x10   : > { %611 = vmatpush3.bf16.msra.mxu0 %v673_v5 }
  0x11   : > { %s183_s6 = scalar_lea.vmem %s809_s0, %s642_s26  ;;  %623 = vmatpush3.bf16.msra.mxu1 %v674_v6  ;;  %612 = vmatprep.subr.bf16.mxu0 %v705_v1  ;;  %s192_s26 = scalar_lea.vmem %s812_s3, %s590_s21 }
  0x12   : > { %v552_v9 = vld [vmem:[%s183_s6 + $0x1] sm:$0xff]  ;;  %v553_v10 = vld [vmem:[%s183_s6 + $0x9] sm:$0xff]  ;;  %624 = vmatprep.subr.bf16.mxu1 %v705_v1 }
  0x13   : > { %v197_v11 = vld [vmem:[%s183_s6] sm:$0xff]  ;;  %v198_v12 = vld [vmem:[%s183_s6 + $0x8] sm:$0xff]  ;;  %v212_v13 = vpack.c.bf16 %v553_v10, %v552_v9 }
  0x14   : > { %613 = vmatpush3.bf16.msra.mxu0 %v675_v7  ;;  %v199_v14 = vpack.c.bf16 %v198_v12, %v197_v11  ;;  %v572_v19 = vld [vmem:[%s183_s6 + $0x2] sm:$0xff]  ;;  %v573_v20 = vld [vmem:[%s183_s6 + $0xa] sm:$0xff] }
  0x15   : > { %625 = vmatpush3.bf16.msra.mxu1 %v676_v8  ;;  %630 = vmatprep.subr.bf16.mxu0 %v705_v1  ;;  %v363_v21 = vpack.c.bf16 %v573_v20, %v572_v19 }
  0x17   : > { %615 = vmatmul.mubr.msk.bf16.vlgmr.msra.gmra.mrb[0].mxu0 %vm246_vm1, %v212_v13 }
  0x18   : > { %627 = vmatmul.mubr.msk.bf16.vlgmr.msra.gmra.mrb[0].mxu1 %vm246_vm1, %v199_v14  ;;  %631 = vmatpush3.bf16.msra.mxu0 %v677_v15 }
  0x19   : > { %632 = vmatprep.subr.bf16.mxu0 %v705_v1  ;;  %638 = vmatprep.mubr.msk.bf16.mxu0 %vm706_vm0, %v705_v1 }
  0x1c   : > { %633 = vmatpush3.bf16.msra.mxu0 %v678_v16 }
  0x1d   : > { %634 = vmatprep.subr.bf16.mxu0 %v705_v1 }
  0x20   : > { %635 = vmatpush3.bf16.msra.mxu0 %v679_v17 }
  0x21   : > { %636 = vmatprep.subr.bf16.mxu0 %v705_v1 }
  0x24   : > { %637 = vmatpush3.bf16.msra.mxu0 %v680_v18 }
  0x27   : > { %639 = vmatmul.mubr.msk.bf16.vlgmr.msra.gmra.mrb[4].mxu0 %vm246_vm1, %v363_v21 }
  0xea   : > { %v284_v22 = vpop.f32.mrb[0].mxu0 }
  0xeb   : > { %v352_v23 = vpop.f32.mrb[0].mxu1  ;;  %v616_v24 = vpop.f32.mrb[1].mxu0 }
  0xec   : > { %v353_v25 = vadd.f32 %v352_v23, %v284_v22  ;;  %v628_v26 = vpop.f32.mrb[1].mxu1  ;;  %v287_v27 = vpop.f32.mrb[2].mxu0 }
  0xed   : > { %v355_v28 = vpop.f32.mrb[2].mxu1  ;;  %v617_v29 = vpop.f32.mrb[3].mxu0 }
  0xee   : > { %v356_v30 = vadd.f32 %v355_v28, %v287_v27  ;;  %v629_v31 = vpop.f32.mrb[3].mxu1 }
  0xfa   : > { %v434_v32 = vpop.f32.mrb[4].mxu0 }
  0xfb   : > { %v441_v34 = vadd.f32 %v434_v32, %v353_v25  ;;  %v640_v35 = vpop.f32.mrb[5].mxu0 }
  0xfc   : > { %v437_v36 = vpop.f32.mrb[6].mxu0 }
  0xfd   : > { %v450_v37 = vadd.f32 %v587_v33, %v441_v34  ;;  %v442_v38 = vadd.f32 %v437_v36, %v356_v30  ;;  %v641_v39 = vpop.f32.mrb[7].mxu0 }
  0xff   : > { %453 = vst.msk [vmem:[%s192_s26] sm:$0xff] %vm452_vm2, %v450_v37  ;;  %v451_v40 = vadd.f32 %v587_v33, %v442_v38 }
 0x101   : > { %454 = vst.msk [vmem:[%s192_s26 + $0x8] sm:$0xff] %vm452_vm2, %v451_v40 }
 0x102 PF: > { %s13_s14 = sadd.s32 1, %s703_s14   ;;  %s813_s12 = smov %s699_s13 }
 0x103   : > { %p10_p5 = scmp.ge.s32.totalorder %s13_s14, 4   ;;  %s814_s13 = smov %s816_s15 }
 0x105   :  { %12 = sbr.rel (!%p10_p5) target bundleno = 2 (0x2), region = 67 }

</bundles_post_ra>
